<compile_context>
chip_gen: v7x
topology: tpu7x:2x2x1
jax: 0.10.0
libtpu: 0.0.40
codegen_flags: <defaults>
</compile_context>

<pallas_src>
import functools

import jax
import jax.numpy as jnp
import numpy as np
from jax.experimental import pallas as pl
from jax.experimental.pallas import tpu as pltpu

_PART_LANES = 128          # lane-dense slab width for per-tile loss partials
_INV_SQRT2 = 0.7071067811865475


# ---------------------------------------------------------------------------
# Kernel: gate matmul + softmax routing + top-1 mask + fused expert compute
#         + per-tile partial sums for the three auxiliary losses.
# ---------------------------------------------------------------------------
def moe_kernel(x_ref, wg_ref, w1_ref, b1_ref, w2_ref, b2_ref, label_ref,
               weighted_ref, part_ref, *, num_experts):
    E = num_experts
    x = x_ref[...]                                  # [TB, H] compute dtype
    TB, H = x.shape
    C = weighted_ref.shape[1]

    # ---- gate: one MXU matmul, f32 accumulation -----------------------------
    gate_logits = jnp.dot(x, wg_ref[...], preferred_element_type=jnp.float32)

    m = jnp.max(gate_logits, axis=-1, keepdims=True)
    ex = jnp.exp(gate_logits - m)
    denom = jnp.sum(ex, axis=-1, keepdims=True)
    probs = ex / denom                                               # [TB, E]
    lse = m + jnp.log(denom)                                         # [TB, 1]

    # top-1 routing (first index of the maximum, matching argmax semantics)
    p_max = jnp.max(probs, axis=-1, keepdims=True)                   # [TB, 1]
    col_e = jax.lax.broadcasted_iota(jnp.int32, (TB, E), 1)
    first_idx = jnp.min(jnp.where(probs >= p_max, col_e, E),
                        axis=-1, keepdims=True)                      # [TB, 1]
    onehot = (col_e == first_idx).astype(jnp.float32)                # [TB, E]

    # ---- experts (fused) -----------------------------------------------------
    # Layer 1: single wide lane-dense matmul over all experts at once.
    h = jnp.dot(x, w1_ref[...], preferred_element_type=jnp.float32) + b1_ref[...]
    # Keep only the selected expert's H-wide lane block per row (top-1 mask).
    lane = jax.lax.broadcasted_iota(jnp.int32, (TB, E * H), 1)
    lo = first_idx * H
    keep = (lane >= lo) & (lane < lo + H)
    h = jnp.where(keep, h, 0.0)
    # Exact GELU (nn.GELU default); GELU(0) == 0 so masked lanes stay zero.
    h = 0.5 * h * (1.0 + jax.lax.erf(h * _INV_SQRT2))
    # Layer 2: single [TB, E*H] @ [E*H, C] matmul; zeroed blocks contribute 0.
    y = jnp.dot(h.astype(x.dtype), w2_ref[...],
                preferred_element_type=jnp.float32)
    # Selected expert's bias via a tiny onehot @ b2 matmul.
    y = y + jnp.dot(onehot, b2_ref[...], preferred_element_type=jnp.float32)
    # Per-expert softmax head.
    ym = jnp.max(y, axis=-1, keepdims=True)
    ye = jnp.exp(y - ym)
    y = ye / jnp.sum(ye, axis=-1, keepdims=True)                     # [TB, C]

    # weight = p_max + stop_grad(1 - p_max)   (forward value == 1.0)
    weight = p_max + jax.lax.stop_gradient(1.0 - p_max)
    weighted = y * weight
    weighted_ref[...] = weighted

    # ---- per-sample CE on weighted probs treated as logits (as in the spec) -
    labels = label_ref[...]                                          # [TB, 1]
    col_c = jax.lax.broadcasted_iota(jnp.int32, (TB, C), 1)
    label_oh = (col_c == labels).astype(jnp.float32)
    wm = jnp.max(weighted, axis=-1, keepdims=True)
    wlse = wm + jnp.log(jnp.sum(jnp.exp(weighted - wm), axis=-1, keepdims=True))
    per_ce = wlse - jnp.sum(weighted * label_oh, axis=-1, keepdims=True)

    # ---- pack per-tile loss partial sums into one lane-dense [1, 128] slab --
    #   lanes [0:E)      sum_b probs[b, e]
    #   lanes [E:2E)     sum_b onehot[b, e]
    #   lane  2E         sum_b lse[b]^2
    #   lane  2E+1       sum_b per_sample_ce[b]
    part_ref[...] = jnp.zeros((1, _PART_LANES), jnp.float32)
    part_ref[:, 0:E] = jnp.sum(probs, axis=0, keepdims=True)
    part_ref[:, E:2 * E] = jnp.sum(onehot, axis=0, keepdims=True)
    part_ref[:, 2 * E:2 * E + 1] = jnp.sum(lse * lse, axis=0, keepdims=True)
    part_ref[:, 2 * E + 1:2 * E + 2] = jnp.sum(per_ce, axis=0, keepdims=True)


# ---------------------------------------------------------------------------
# One-time parameter preparation (transpose / concat / cast done ONCE,
# not per forward step).
# ---------------------------------------------------------------------------
def prepare_moe_params(gate_w, w1, b1, w2, b2, *, compute_dtype=jnp.bfloat16):
    """gate_w: [E,H]; w1: [E,H,H]; b1: [E,H]; w2: [E,C,H]; b2: [E,C]
    (torch nn.Linear layouts).  Returns kernel-ready tensors."""
    E, H = gate_w.shape
    C = w2.shape[1]
    wg_t = jnp.transpose(gate_w, (1, 0)).astype(compute_dtype)          # [H, E]
    w1_t = jnp.transpose(w1, (0, 2, 1))                                 # [E, Hin, Hout]
    w1cat = (jnp.transpose(w1_t, (1, 0, 2))
             .reshape(H, E * H).astype(compute_dtype))                  # [H, E*H]
    b1cat = jnp.reshape(b1, (1, E * H)).astype(jnp.float32)             # [1, E*H]
    w2cat = (jnp.transpose(w2, (0, 2, 1))
             .reshape(E * H, C).astype(compute_dtype))                  # [E*H, C]
    b2f = b2.astype(jnp.float32)                                        # [E, C]
    return wg_t, w1cat, b1cat, w2cat, b2f


# ---------------------------------------------------------------------------
# Forward wrapper: batch-tiled parallel grid + partial-sum reduction.
# ---------------------------------------------------------------------------
@functools.partial(jax.jit, static_argnames=("block_b",))
def moe_forward(x, class_label, wg, w1cat, b1cat, w2cat, b2, *, block_b=None):
    B, H = x.shape
    E = wg.shape[1]
    C = w2cat.shape[1]
    compute_dtype = wg.dtype

    if block_b is None:
        block_b = B if B <= 512 else 512
    if B % block_b != 0:
        raise ValueError(f"B={B} must be divisible by block_b={block_b}")
    if block_b != B and block_b % 8 != 0:
        raise ValueError("block_b must be a multiple of 8 (sublane tiling)")
    num_tiles = B // block_b

    xk = x.astype(compute_dtype)
    labels = class_label.astype(jnp.int32).reshape(B, 1)

    kernel = functools.partial(moe_kernel, num_experts=E)

    weighted, parts = pl.pallas_call(
        kernel,
        grid=(num_tiles,),
        in_specs=[
            pl.BlockSpec((block_b, H), lambda i: (i, 0)),        # x tile
            pl.BlockSpec((H, E), lambda i: (0, 0)),              # gate W
            pl.BlockSpec((H, E * H), lambda i: (0, 0)),          # W1cat
            pl.BlockSpec((1, E * H), lambda i: (0, 0)),          # b1cat
            pl.BlockSpec((E * H, C), lambda i: (0, 0)),          # W2cat
            pl.BlockSpec((E, C), lambda i: (0, 0)),              # b2
            pl.BlockSpec((block_b, 1), lambda i: (i, 0)),        # labels tile
        ],
        out_specs=(
            pl.BlockSpec((block_b, C), lambda i: (i, 0)),                 # weighted
            pl.BlockSpec((None, 1, _PART_LANES), lambda i: (i, 0, 0)),    # partials
        ),
        out_shape=(
            jax.ShapeDtypeStruct((B, C), jnp.float32),
            jax.ShapeDtypeStruct((num_tiles, 1, _PART_LANES), jnp.float32),
        ),
        compiler_params=pltpu.CompilerParams(
            dimension_semantics=("parallel",),
            vmem_limit_bytes=64 * 1024 * 1024,
        ),
    )(xk, wg, w1cat, b1cat, w2cat, b2, labels)

    # Finish the batch-mean reductions in the wrapper (keeps grid axis parallel).
    psum = jnp.sum(parts, axis=(0, 1))                     # [128]
    routing_mean = psum[0:E] / B
    dispatch_frac = psum[E:2 * E] / B
    bal = jnp.sum(routing_mean * dispatch_frac) * E
    z = psum[2 * E] / B
    ce = psum[2 * E + 1] / B
    loss = ce + 0.01 * bal + 0.001 * z
    pred = jnp.argmax(weighted, axis=-1)
    return loss, {"ce_loss": ce, "balancing_loss": bal,
                  "router_z_loss": z, "pred": pred}


# ---------------------------------------------------------------------------
# Pure-JAX reference (mirrors the PyTorch forward).  `compute_dtype` optionally
# mirrors the kernel's bf16 matmul-input casts so the bf16 path can be checked
# tightly.
# ---------------------------------------------------------------------------
def moe_reference(x, gate_w, w1, b1, w2, b2, class_label, *, num_experts,
                  compute_dtype=jnp.float32):
    E = num_experts
    cd = compute_dtype
    xc = x.astype(cd)
    gate_logits = jnp.dot(xc, gate_w.astype(cd).T,
                          preferred_element_type=jnp.float32)
    probs = jax.nn.softmax(gate_logits, axis=-1)
    idx = jnp.argmax(probs, axis=-1)
    onehot = jax.nn.one_hot(idx, E)
    bal = jnp.sum(probs.mean(0) * onehot.mean(0)) * E
    z = jnp.mean(jax.nn.logsumexp(gate_logits, axis=-1) ** 2)

    h = jnp.einsum("bh,eoh->beo", xc, w1.astype(cd),
                   preferred_element_type=jnp.float32) + b1[None]
    h = jax.nn.gelu(h, approximate=False)
    y = jnp.einsum("beh,ech->bec", h.astype(cd), w2.astype(cd),
                   preferred_element_type=jnp.float32) + b2[None]
    y = jax.nn.softmax(y, axis=-1)
    sel = jnp.take_along_axis(y, idx[:, None, None], axis=1)[:, 0, :]   # [B, C]

    p_max = jnp.max(probs, axis=-1)
    weight = p_max + jax.lax.stop_gradient(1.0 - p_max)
    weighted = sel * weight[:, None]
    pred = jnp.argmax(weighted, axis=-1)

    wlse = jax.nn.logsumexp(weighted, axis=-1)
    picked = jnp.take_along_axis(weighted, class_label[:, None], axis=1)[:, 0]
    ce = jnp.mean(wlse - picked)
    loss = ce + 0.01 * bal + 0.001 * z
    return loss, {"ce_loss": ce, "balancing_loss": bal,
                  "router_z_loss": z, "pred": pred}


if __name__ == "__main__":
    B, H, E, C = 16, 32, 8, 2     # batch, hidden_size, num_experts, num classes

    key = jax.random.PRNGKey(0)
    kx, kg, k1, kb1, k2, kb2, kl = jax.random.split(key, 7)

    x = jax.random.normal(kx, (B, H), jnp.float32)             # pooler_output stand-in
    gate_w = jax.random.normal(kg, (E, H), jnp.float32) * 0.1  # nn.Linear(H, E, bias=False)
    w1 = jax.random.normal(k1, (E, H, H), jnp.float32) * 0.1   # expert Linear(H, H)
    b1 = jax.random.normal(kb1, (E, H), jnp.float32) * 0.1
    w2 = jax.random.normal(k2, (E, C, H), jnp.float32) * 0.1   # expert Linear(H, 2)
    b2 = jax.random.normal(kb2, (E, C), jnp.float32) * 0.1
    class_label = jax.random.randint(kl, (B,), 0, C, jnp.int32)

    # ---- strict f32 debug path: exact-semantics parity check -----------------
    p32 = prepare_moe_params(gate_w, w1, b1, w2, b2, compute_dtype=jnp.float32)
    loss32, aux32 = moe_forward(x, class_label, *p32, block_b=8)  # 2 batch tiles
    jax.block_until_ready(loss32)
    ref_loss, ref_aux = moe_reference(x, gate_w, w1, b1, w2, b2, class_label,
                                      num_experts=E, compute_dtype=jnp.float32)
    np.testing.assert_allclose(np.asarray(loss32), np.asarray(ref_loss),
                               rtol=1e-4, atol=1e-4)
    for k in ("ce_loss", "balancing_loss", "router_z_loss"):
        np.testing.assert_allclose(np.asarray(aux32[k]), np.asarray(ref_aux[k]),
                                   rtol=1e-4, atol=1e-4)
    assert np.array_equal(np.asarray(aux32["pred"]), np.asarray(ref_aux["pred"]))

    # ---- bf16 fast path (MXU-native), checked against a bf16-aware reference -
    pbf = prepare_moe_params(gate_w, w1, b1, w2, b2, compute_dtype=jnp.bfloat16)
    loss16, aux16 = moe_forward(x, class_label, *pbf, block_b=8)
    jax.block_until_ready(loss16)
    jax.block_until_ready(aux16["pred"])
    ref16_loss, ref16_aux = moe_reference(x, gate_w, w1, b1, w2, b2, class_label,
                                          num_experts=E,
                                          compute_dtype=jnp.bfloat16)
    np.testing.assert_allclose(np.asarray(loss16), np.asarray(ref16_loss),
                               rtol=2e-3, atol=2e-3)
    for k in ("ce_loss", "balancing_loss", "router_z_loss"):
        np.testing.assert_allclose(np.asarray(aux16[k]), np.asarray(ref16_aux[k]),
                                   rtol=2e-3, atol=2e-3)
    # (pred equality is asserted only on the f32 path; bf16 ties could flip.)

    print("KERNEL_OK")
</pallas_src>

<mosaic_0001>
module attributes {stable_mosaic.version = 11 : i64} {
  func.func @moe_kernel(%arg0: i32, %arg1: memref<8x32xf32, #tpu.memory_space<vmem>>, %arg2: memref<32x8xf32, #tpu.memory_space<vmem>>, %arg3: memref<32x256xf32, #tpu.memory_space<vmem>>, %arg4: memref<1x256xf32, #tpu.memory_space<vmem>>, %arg5: memref<256x2xf32, #tpu.memory_space<vmem>>, %arg6: memref<8x2xf32, #tpu.memory_space<vmem>>, %arg7: memref<8x1xi32, #tpu.memory_space<vmem>>, %arg8: memref<8x2xf32, #tpu.memory_space<vmem>>, %arg9: memref<1x1x128xf32, #tpu.memory_space<vmem>>) attributes {dimension_semantics = [#tpu.dimension_semantics<parallel>], iteration_bounds = array<i64: 2>, scalar_prefetch = 0 : i64, scratch_operands = 0 : i64, tpu.core_type = #tpu.core_type<tc>, window_params = [{transform_indices = @transform_0, window_bounds = array<i64: 8, 32>}, {pipeline_mode = #tpu.pipeline_mode<synchronous>, transform_indices = @transform_1, window_bounds = array<i64: 32, 8>}, {pipeline_mode = #tpu.pipeline_mode<synchronous>, transform_indices = @transform_2, window_bounds = array<i64: 32, 256>}, {pipeline_mode = #tpu.pipeline_mode<synchronous>, transform_indices = @transform_3, window_bounds = array<i64: 1, 256>}, {pipeline_mode = #tpu.pipeline_mode<synchronous>, transform_indices = @transform_4, window_bounds = array<i64: 256, 2>}, {pipeline_mode = #tpu.pipeline_mode<synchronous>, transform_indices = @transform_5, window_bounds = array<i64: 8, 2>}, {transform_indices = @transform_6, window_bounds = array<i64: 8, 1>}, {transform_indices = @transform_7, window_bounds = array<i64: 8, 2>}, {transform_indices = @transform_8, window_bounds = array<i64: 1, 1, 128>}]} {
    %c0 = arith.constant 0 : index
    %c0_0 = arith.constant 0 : index
    %0 = vector.load %arg1[%c0, %c0_0] : memref<8x32xf32, #tpu.memory_space<vmem>>, vector<8x32xf32>
    %c0_1 = arith.constant 0 : index
    %c0_2 = arith.constant 0 : index
    %1 = vector.load %arg2[%c0_1, %c0_2] : memref<32x8xf32, #tpu.memory_space<vmem>>, vector<32x8xf32>
    %cst = arith.constant dense<0.000000e+00> : vector<8x8xf32>
    %2 = tpu.matmul %0, %1, %cst {dimension_numbers = #tpu.dot_dimension_numbers<[1], [0], [0], [1], [0, 0, 1, 1], [], []>} : vector<8x32xf32>, vector<32x8xf32>, vector<8x8xf32> -> vector<8x8xf32>
    %cst_3 = arith.constant dense<0xFF800000> : vector<8xf32>
    %3 = vector.multi_reduction <maximumf>, %2, %cst_3 [1] : vector<8x8xf32> to vector<8xf32>
    %4 = vector.shape_cast %3 : vector<8xf32> to vector<8x1xf32>
    %5 = vector.broadcast %4 : vector<8x1xf32> to vector<8x8xf32>
    %6 = arith.subf %2, %5 : vector<8x8xf32>
    %7 = math.exp %6 : vector<8x8xf32>
    %cst_4 = arith.constant dense<0.000000e+00> : vector<8xf32>
    %8 = vector.multi_reduction <add>, %7, %cst_4 [1] : vector<8x8xf32> to vector<8xf32>
    %9 = vector.shape_cast %8 : vector<8xf32> to vector<8x1xf32>
    %10 = vector.broadcast %9 : vector<8x1xf32> to vector<8x8xf32>
    %11 = arith.divf %7, %10 : vector<8x8xf32>
    %12 = math.log %9 : vector<8x1xf32>
    %13 = arith.addf %4, %12 : vector<8x1xf32>
    %cst_5 = arith.constant dense<0xFF800000> : vector<8xf32>
    %14 = vector.multi_reduction <maximumf>, %11, %cst_5 [1] : vector<8x8xf32> to vector<8xf32>
    %15 = vector.shape_cast %14 : vector<8xf32> to vector<8x1xf32>
    %16 = tpu.iota {dimensions = array<i32: 1>} : vector<8x8xi32>
    %17 = vector.broadcast %15 : vector<8x1xf32> to vector<8x8xf32>
    %18 = arith.cmpf oge, %11, %17 : vector<8x8xf32>
    %c8_i32 = arith.constant 8 : i32
    %19 = vector.broadcast %c8_i32 : i32 to vector<8x8xi32>
    %20 = arith.select %18, %16, %19 : vector<8x8xi1>, vector<8x8xi32>
    %cst_6 = arith.constant dense<2147483647> : vector<8xi32>
    %21 = vector.multi_reduction <minsi>, %20, %cst_6 [1] : vector<8x8xi32> to vector<8xi32>
    %22 = vector.shape_cast %21 : vector<8xi32> to vector<8x1xi32>
    %23 = vector.broadcast %22 : vector<8x1xi32> to vector<8x8xi32>
    %24 = arith.cmpi eq, %16, %23 : vector<8x8xi32>
    %25 = arith.extui %24 : vector<8x8xi1> to vector<8x8xi32>
    %26 = arith.sitofp %25 : vector<8x8xi32> to vector<8x8xf32>
    %c0_7 = arith.constant 0 : index
    %c0_8 = arith.constant 0 : index
    %27 = vector.load %arg3[%c0_7, %c0_8] : memref<32x256xf32, #tpu.memory_space<vmem>>, vector<32x256xf32>
    %cst_9 = arith.constant dense<0.000000e+00> : vector<8x256xf32>
    %28 = tpu.matmul %0, %27, %cst_9 {dimension_numbers = #tpu.dot_dimension_numbers<[1], [0], [0], [1], [0, 0, 1, 1], [], []>} : vector<8x32xf32>, vector<32x256xf32>, vector<8x256xf32> -> vector<8x256xf32>
    %c0_10 = arith.constant 0 : index
    %c0_11 = arith.constant 0 : index
    %29 = vector.load %arg4[%c0_10, %c0_11] : memref<1x256xf32, #tpu.memory_space<vmem>>, vector<1x256xf32>
    %30 = vector.broadcast %29 : vector<1x256xf32> to vector<8x256xf32>
    %31 = arith.addf %28, %30 : vector<8x256xf32>
    %32 = tpu.iota {dimensions = array<i32: 1>} : vector<8x256xi32>
    %c32_i32 = arith.constant 32 : i32
    %33 = vector.broadcast %c32_i32 : i32 to vector<8x1xi32>
    %34 = arith.muli %22, %33 : vector<8x1xi32>
    %35 = vector.broadcast %34 : vector<8x1xi32> to vector<8x256xi32>
    %36 = arith.cmpi sge, %32, %35 : vector<8x256xi32>
    %c32_i32_12 = arith.constant 32 : i32
    %37 = vector.broadcast %c32_i32_12 : i32 to vector<8x1xi32>
    %38 = arith.addi %34, %37 : vector<8x1xi32>
    %39 = vector.broadcast %38 : vector<8x1xi32> to vector<8x256xi32>
    %40 = arith.cmpi slt, %32, %39 : vector<8x256xi32>
    %41 = arith.andi %36, %40 : vector<8x256xi1>
    %cst_13 = arith.constant 0.000000e+00 : f32
    %42 = vector.broadcast %cst_13 : f32 to vector<8x256xf32>
    %43 = arith.select %41, %31, %42 : vector<8x256xi1>, vector<8x256xf32>
    %cst_14 = arith.constant 5.000000e-01 : f32
    %44 = vector.broadcast %cst_14 : f32 to vector<8x256xf32>
    %45 = arith.mulf %44, %43 : vector<8x256xf32>
    %cst_15 = arith.constant 0.707106769 : f32
    %46 = vector.broadcast %cst_15 : f32 to vector<8x256xf32>
    %47 = arith.mulf %43, %46 : vector<8x256xf32>
    %48 = math.erf %47 : vector<8x256xf32>
    %cst_16 = arith.constant 1.000000e+00 : f32
    %49 = vector.broadcast %cst_16 : f32 to vector<8x256xf32>
    %50 = arith.addf %49, %48 : vector<8x256xf32>
    %51 = arith.mulf %45, %50 : vector<8x256xf32>
    %c0_17 = arith.constant 0 : index
    %c0_18 = arith.constant 0 : index
    %52 = vector.load %arg5[%c0_17, %c0_18] : memref<256x2xf32, #tpu.memory_space<vmem>>, vector<256x2xf32>
    %cst_19 = arith.constant dense<0.000000e+00> : vector<8x2xf32>
    %53 = tpu.matmul %51, %52, %cst_19 {dimension_numbers = #tpu.dot_dimension_numbers<[1], [0], [0], [1], [0, 0, 1, 1], [], []>} : vector<8x256xf32>, vector<256x2xf32>, vector<8x2xf32> -> vector<8x2xf32>
    %c0_20 = arith.constant 0 : index
    %c0_21 = arith.constant 0 : index
    %54 = vector.load %arg6[%c0_20, %c0_21] : memref<8x2xf32, #tpu.memory_space<vmem>>, vector<8x2xf32>
    %cst_22 = arith.constant dense<0.000000e+00> : vector<8x2xf32>
    %55 = tpu.matmul %26, %54, %cst_22 {dimension_numbers = #tpu.dot_dimension_numbers<[1], [0], [0], [1], [0, 0, 1, 1], [], []>} : vector<8x8xf32>, vector<8x2xf32>, vector<8x2xf32> -> vector<8x2xf32>
    %56 = arith.addf %53, %55 : vector<8x2xf32>
    %cst_23 = arith.constant dense<0xFF800000> : vector<8xf32>
    %57 = vector.multi_reduction <maximumf>, %56, %cst_23 [1] : vector<8x2xf32> to vector<8xf32>
    %58 = vector.shape_cast %57 : vector<8xf32> to vector<8x1xf32>
    %59 = vector.broadcast %58 : vector<8x1xf32> to vector<8x2xf32>
    %60 = arith.subf %56, %59 : vector<8x2xf32>
    %61 = math.exp %60 : vector<8x2xf32>
    %cst_24 = arith.constant dense<0.000000e+00> : vector<8xf32>
    %62 = vector.multi_reduction <add>, %61, %cst_24 [1] : vector<8x2xf32> to vector<8xf32>
    %63 = vector.shape_cast %62 : vector<8xf32> to vector<8x1xf32>
    %64 = vector.broadcast %63 : vector<8x1xf32> to vector<8x2xf32>
    %65 = arith.divf %61, %64 : vector<8x2xf32>
    %cst_25 = arith.constant 1.000000e+00 : f32
    %66 = vector.broadcast %cst_25 : f32 to vector<8x1xf32>
    %67 = arith.subf %66, %15 : vector<8x1xf32>
    %68 = arith.addf %15, %67 : vector<8x1xf32>
    %69 = vector.broadcast %68 : vector<8x1xf32> to vector<8x2xf32>
    %70 = arith.mulf %65, %69 : vector<8x2xf32>
    %c0_26 = arith.constant 0 : index
    %c0_27 = arith.constant 0 : index
    %71 = vector.load %arg8[%c0_26, %c0_27] : memref<8x2xf32, #tpu.memory_space<vmem>>, vector<8x2xf32>
    tpu.vector_store %arg8[%c0_26, %c0_27], %70 {strides = array<i32>} : memref<8x2xf32, #tpu.memory_space<vmem>>, vector<8x2xf32>,
    %c0_28 = arith.constant 0 : index
    %c0_29 = arith.constant 0 : index
    %72 = vector.load %arg7[%c0_28, %c0_29] : memref<8x1xi32, #tpu.memory_space<vmem>>, vector<8x1xi32>
    %73 = tpu.iota {dimensions = array<i32: 1>} : vector<8x2xi32>
    %74 = vector.broadcast %72 : vector<8x1xi32> to vector<8x2xi32>
    %75 = arith.cmpi eq, %73, %74 : vector<8x2xi32>
    %76 = arith.extui %75 : vector<8x2xi1> to vector<8x2xi32>
    %77 = arith.sitofp %76 : vector<8x2xi32> to vector<8x2xf32>
    %cst_30 = arith.constant dense<0xFF800000> : vector<8xf32>
    %78 = vector.multi_reduction <maximumf>, %70, %cst_30 [1] : vector<8x2xf32> to vector<8xf32>
    %79 = vector.shape_cast %78 : vector<8xf32> to vector<8x1xf32>
    %80 = vector.broadcast %79 : vector<8x1xf32> to vector<8x2xf32>
    %81 = arith.subf %70, %80 : vector<8x2xf32>
    %82 = math.exp %81 : vector<8x2xf32>
    %cst_31 = arith.constant dense<0.000000e+00> : vector<8xf32>
    %83 = vector.multi_reduction <add>, %82, %cst_31 [1] : vector<8x2xf32> to vector<8xf32>
    %84 = vector.shape_cast %83 : vector<8xf32> to vector<8x1xf32>
    %85 = math.log %84 : vector<8x1xf32>
    %86 = arith.addf %79, %85 : vector<8x1xf32>
    %87 = arith.mulf %70, %77 : vector<8x2xf32>
    %cst_32 = arith.constant dense<0.000000e+00> : vector<8xf32>
    %88 = vector.multi_reduction <add>, %87, %cst_32 [1] : vector<8x2xf32> to vector<8xf32>
    %89 = vector.shape_cast %88 : vector<8xf32> to vector<8x1xf32>
    %90 = arith.subf %86, %89 : vector<8x1xf32>
    %cst_33 = arith.constant 0.000000e+00 : f32
    %91 = vector.broadcast %cst_33 : f32 to vector<1x128xf32>
    %c0_34 = arith.constant 0 : index
    %c0_35 = arith.constant 0 : index
    %c0_36 = arith.constant 0 : index
    %92 = vector.load %arg9[%c0_34, %c0_35, %c0_36] : memref<1x1x128xf32, #tpu.memory_space<vmem>>, vector<1x1x128xf32>
    %93 = vector.shape_cast %92 : vector<1x1x128xf32> to vector<1x128xf32>
    %94 = vector.shape_cast %91 : vector<1x128xf32> to vector<1x1x128xf32>
    tpu.vector_store %arg9[%c0_34, %c0_35, %c0_36], %94 {strides = array<i32>} : memref<1x1x128xf32, #tpu.memory_space<vmem>>, vector<1x1x128xf32>,
    %cst_37 = arith.constant dense<0.000000e+00> : vector<8xf32>
    %95 = vector.multi_reduction <add>, %11, %cst_37 [0] : vector<8x8xf32> to vector<8xf32>
    %96 = vector.shape_cast %95 : vector<8xf32> to vector<1x8xf32>
    %c0_38 = arith.constant 0 : index
    %c0_39 = arith.constant 0 : index
    %c0_40 = arith.constant 0 : index
    %97 = vector.load %arg9[%c0_38, %c0_39, %c0_40] : memref<1x1x128xf32, #tpu.memory_space<vmem>>, vector<1x1x8xf32>
    %98 = vector.shape_cast %97 : vector<1x1x8xf32> to vector<1x8xf32>
    %99 = vector.shape_cast %96 : vector<1x8xf32> to vector<1x1x8xf32>
    tpu.vector_store %arg9[%c0_38, %c0_39, %c0_40], %99 {strides = array<i32>} : memref<1x1x128xf32, #tpu.memory_space<vmem>>, vector<1x1x8xf32>,
    %cst_41 = arith.constant dense<0.000000e+00> : vector<8xf32>
    %100 = vector.multi_reduction <add>, %26, %cst_41 [0] : vector<8x8xf32> to vector<8xf32>
    %101 = vector.shape_cast %100 : vector<8xf32> to vector<1x8xf32>
    %c0_42 = arith.constant 0 : index
    %c0_43 = arith.constant 0 : index
    %c8 = arith.constant 8 : index
    %102 = vector.load %arg9[%c0_42, %c0_43, %c8] : memref<1x1x128xf32, #tpu.memory_space<vmem>>, vector<1x1x8xf32>
    %103 = vector.shape_cast %102 : vector<1x1x8xf32> to vector<1x8xf32>
    %104 = vector.shape_cast %101 : vector<1x8xf32> to vector<1x1x8xf32>
    tpu.vector_store %arg9[%c0_42, %c0_43, %c8], %104 {strides = array<i32>} : memref<1x1x128xf32, #tpu.memory_space<vmem>>, vector<1x1x8xf32>,
    %105 = arith.mulf %13, %13 : vector<8x1xf32>
    %cst_44 = arith.constant dense<0.000000e+00> : vector<1xf32>
    %106 = vector.multi_reduction <add>, %105, %cst_44 [0] : vector<8x1xf32> to vector<1xf32>
    %107 = vector.shape_cast %106 : vector<1xf32> to vector<1x1xf32>
    %c0_45 = arith.constant 0 : index
    %c0_46 = arith.constant 0 : index
    %c16 = arith.constant 16 : index
    %108 = vector.load %arg9[%c0_45, %c0_46, %c16] : memref<1x1x128xf32, #tpu.memory_space<vmem>>, vector<1x1x1xf32>
    %109 = vector.shape_cast %108 : vector<1x1x1xf32> to vector<1x1xf32>
    %110 = vector.shape_cast %107 : vector<1x1xf32> to vector<1x1x1xf32>
    tpu.vector_store %arg9[%c0_45, %c0_46, %c16], %110 {strides = array<i32>} : memref<1x1x128xf32, #tpu.memory_space<vmem>>, vector<1x1x1xf32>,
    %cst_47 = arith.constant dense<0.000000e+00> : vector<1xf32>
    %111 = vector.multi_reduction <add>, %90, %cst_47 [0] : vector<8x1xf32> to vector<1xf32>
    %112 = vector.shape_cast %111 : vector<1xf32> to vector<1x1xf32>
    %c0_48 = arith.constant 0 : index
    %c0_49 = arith.constant 0 : index
    %c17 = arith.constant 17 : index
    %113 = vector.load %arg9[%c0_48, %c0_49, %c17] : memref<1x1x128xf32, #tpu.memory_space<vmem>>, vector<1x1x1xf32>
    %114 = vector.shape_cast %113 : vector<1x1x1xf32> to vector<1x1xf32>
    %115 = vector.shape_cast %112 : vector<1x1xf32> to vector<1x1x1xf32>
    tpu.vector_store %arg9[%c0_48, %c0_49, %c17], %115 {strides = array<i32>} : memref<1x1x128xf32, #tpu.memory_space<vmem>>, vector<1x1x1xf32>,
    return
  }
  func.func @transform_0(%arg0: i32) -> (i32, i32) {
    %c0_i32 = arith.constant 0 : i32
    %c0_i32_0 = arith.constant 0 : i32
    return %arg0, %c0_i32 : i32, i32
  }
  func.func @transform_1(%arg0: i32) -> (i32, i32) {
    %c0_i32 = arith.constant 0 : i32
    %c0_i32_0 = arith.constant 0 : i32
    %c0_i32_1 = arith.constant 0 : i32
    return %c0_i32, %c0_i32_0 : i32, i32
  }
  func.func @transform_2(%arg0: i32) -> (i32, i32) {
    %c0_i32 = arith.constant 0 : i32
    %c0_i32_0 = arith.constant 0 : i32
    %c0_i32_1 = arith.constant 0 : i32
    return %c0_i32, %c0_i32_0 : i32, i32
  }
  func.func @transform_3(%arg0: i32) -> (i32, i32) {
    %c0_i32 = arith.constant 0 : i32
    %c0_i32_0 = arith.constant 0 : i32
    %c0_i32_1 = arith.constant 0 : i32
    return %c0_i32, %c0_i32_0 : i32, i32
  }
  func.func @transform_4(%arg0: i32) -> (i32, i32) {
    %c0_i32 = arith.constant 0 : i32
    %c0_i32_0 = arith.constant 0 : i32
    %c0_i32_1 = arith.constant 0 : i32
    return %c0_i32, %c0_i32_0 : i32, i32
  }
  func.func @transform_5(%arg0: i32) -> (i32, i32) {
    %c0_i32 = arith.constant 0 : i32
    %c0_i32_0 = arith.constant 0 : i32
    %c0_i32_1 = arith.constant 0 : i32
    return %c0_i32, %c0_i32_0 : i32, i32
  }
  func.func @transform_6(%arg0: i32) -> (i32, i32) {
    %c0_i32 = arith.constant 0 : i32
    %c0_i32_0 = arith.constant 0 : i32
    return %arg0, %c0_i32 : i32, i32
  }
  func.func @transform_7(%arg0: i32) -> (i32, i32) {
    %c0_i32 = arith.constant 0 : i32
    %c0_i32_0 = arith.constant 0 : i32
    return %arg0, %c0_i32 : i32, i32
  }
  func.func @transform_8(%arg0: i32) -> (i32, i32, i32) {
    %c0_i32 = arith.constant 0 : i32
    %c0_i32_0 = arith.constant 0 : i32
    %c0_i32_1 = arith.constant 0 : i32
    return %arg0, %c0_i32, %c0_i32_0 : i32, i32, i32
  }
}

</mosaic_0001>

<bundles_post_ra>
// kernel: moe_forward.1
= control target key start
LH: loop header
LB: loop body
LE: loop exit
PB: predicated region body
PF: predicated region fallthrough
CT: control target
= control target key end

     0   :  { %s2204_s0 = inlined_call_operand.hbm [shape: f32[16,32], index: 0, kind: input, shape index: {}]   ;;  %s2205_s1 = inlined_call_operand.hbm [shape: f32[32,8], index: 1, kind: input, shape index: {}]   ;;  %s2206_s2 = inlined_call_operand.hbm [shape: f32[32,256], index: 2, kind: input, shape index: {}]   ;;  %s2207_s3 = inlined_call_operand.hbm [shape: f32[1,256], index: 3, kind: input, shape index: {}]   ;;  %s2208_s4 = inlined_call_operand.hbm [shape: f32[256,2], index: 4, kind: input, shape index: {}]   ;;  %s2209_s5 = inlined_call_operand.hbm [shape: f32[8,2], index: 5, kind: input, shape index: {}]   ;;  %s2210_s6 = inlined_call_operand.hbm [shape: s32[16,1], index: 6, kind: input, shape index: {}]   ;;  %s2211_s7 = inlined_call_operand.hbm [shape: f32[16,2], index: 7, kind: output, shape index: {0}]   ;;  %s2212_s8 = inlined_call_operand.hbm [shape: f32[2,1,128], index: 8, kind: output, shape index: {1}]  }
   0x1   :  { %2232 = sst [smem:[#allocation30_spill]] %s2204_s0 }
   0x2   :  { %2233 = sst [smem:[#allocation31_spill]] %s2205_s1 }
   0x3   :  { %2234 = sst [smem:[#allocation32_spill]] %s2207_s3 }
   0x4   :  { %2235 = sst [smem:[#allocation33_spill]] %s2211_s7 }
   0x5   :  { %2236 = sst [smem:[#allocation34_spill]] %s2212_s8 }
   0x6   :  { %14 = vsyncpa [#allocation3], 0 }
   0x7   :  { %16 = vsyncpa [#allocation3 + $0x1], 0 }
   0x8   :  { %17 = vsyncpa [#allocation6], 0 }
   0x9   :  { %18 = vsyncpa [#allocation9], 0 }
   0xa   :  { %19 = vsyncpa [#allocation12], 0 }
   0xb   :  { %20 = vsyncpa [#allocation4], 0 }
   0xc   :  { %22 = vsyncpa [#allocation4 + $0x1], 0 }
   0xd   :  { %23 = vsyncpa [#allocation16], 0 }
   0xe   :  { %25 = vsyncpa [#allocation16 + $0x1], 0  ;;  %s1767_s27 = smov 0   ;;  %s1769_s28 = smov 0  }
   0xf   :  { %s1771_s29 = smov 0   ;;  %s1773_s30 = smov 0  }
  0x10 LB: > { %2237 = sst [smem:[#allocation24_spill]] %s1690_s27  ;;  %s1704_s9 = smov [#allocation5]   ;;  %s1702_s30 = sphi %s1773_s30, %s2276_s30   ;;  %s1698_s29 = sphi %s1771_s29, %s2278_s29   ;;  %s1694_s28 = sphi %s1769_s28, %s2280_s28   ;;  %s1690_s27 = sphi %s1767_s27, %s2279_s27  }
  0x11   : > { %2238 = sst [smem:[#allocation25_spill]] %s1698_s29  ;;  %s257_s10 = sshll.u32 %s1704_s9, 4  ;;  %s1793_s10 = int_to_ptr.vmem [resolvable:$true] %s257_s10 }
  0x12   : > { %2239 = sst [smem:[#allocation26_spill]] %s1702_s30  ;;  %s1788_s11 = sadd.s32 4294967295, %s1702_s30  }
  0x13   : > { %p1119_p0 = scmp.ge.s32.totalorder %s1702_s30, 1  ;;  %p2220_p1 = scmp.eq.s32.totalorder %s1788_s11, 0 }
  0x14   : > { %p245_p2 = scmp.lt.s32.totalorder %s1702_s30, 3  ;;  %s1705_s13 = smov [#allocation8]  }
  0x15   : > { %s284_s14 = sshll.u32 %s1705_s13, 4  ;;  %s2242_s1 = sld [smem:[#allocation31_spill]]  ;;  %s1808_s14 = int_to_ptr.vmem [resolvable:$true] %s284_s14 }
  0x16   : > { %p1795_p3 = pnand %p1119_p0, %p245_p2 }
  0x18   : > { %s2240_s12 = scalar_select %p1795_p3, 1, 0 }
  0x19   : > { %p1281_p5 = pneg %p1795_p3 }
  0x1b   : > { %p1804_p6 = pnand %p1281_p5, %p2220_p1  ;;  %s1388_s18 = scalar_lea.hbm %s2242_s1, 512 }
  0x1c   : > { %p1389_p7 = scmp.ne.s32.totalorder %s2242_s1, %s1388_s18  ;;  %p1395_p11 = scmp.lt.u32.totalorder %s1388_s18, %s2242_s1 }
  0x1d   : > { %s2241_s15 = scalar_select %p1804_p6, 1, 0 }
  0x1e   : > { %p1818_p8 = pneg %p1804_p6 }
  0x20   : > { %p1391_p9 = pnand %p1818_p8, %p1389_p7 }
  0x22   : > { %p1392_p10 = pneg %p1391_p9 }
  0x24   : > { %p1397_p12 = pnand %p1395_p11, %p1392_p10 }
  0x26   : > { %1400 = shalt.err (!%p1397_p12)
}
  0x27   : > { %s1401_s24 = scalar_lea.vmem %s1793_s10, 512  ;;  %p1409_p5 = scmp.lt.s32.totalorder %s1793_s10, %s1793_s10 }
  0x28   : > { %p1402_p13 = scmp.ne.s32.totalorder %s1793_s10, %s1401_s24  ;;  %p1410_p4 = scmp.lt.s32.totalorder %s1401_s24, %s1401_s24 }
  0x2a   : > { %p1404_p0 = pnand %p1402_p13, %p1818_p8  ;;  %p1411_p7 = por %p1410_p4, %p1409_p5 }
  0x2c   : > { %p1405_p2 = pneg %p1404_p0 }
  0x2e   : > { %p1412_p9 = pnand %p1411_p7, %p1405_p2 }
  0x30   : > { %1415 = shalt.err (!%p1412_p9)
}
  0x31   : > { %s2213_s25 = smov 128   ;;  %s2214_s26 = smov 8  }
  0x32   : > { %1284 = dma.hbm_to_vmem [thread:$0]  (!%p1804_p6), %s2242_s1, 512, %s1793_s10, [#allocation6], %s2213_s25, %s2213_s25, %s2214_s26  }
  0x33   : > { %s2244_s3 = sld [smem:[#allocation32_spill]] }
  0x39   : > { %s1416_s18 = scalar_lea.hbm %s2244_s3, 32 }
  0x3a   : > { %p1417_p4 = scmp.ne.s32.totalorder %s2244_s3, %s1416_s18  ;;  %p1423_p12 = scmp.lt.u32.totalorder %s1416_s18, %s2244_s3 }
  0x3c   : > { %p1419_p10 = pnand %p1417_p4, %p1818_p8 }
  0x3e   : > { %p1420_p11 = pneg %p1419_p10 }
  0x40   : > { %p1425_p13 = pnand %p1423_p12, %p1420_p11 }
  0x42   : > { %1428 = shalt.err (!%p1425_p13)
}
  0x43   : > { %s1429_s10 = scalar_lea.vmem %s1808_s14, 32  ;;  %p1437_p7 = scmp.lt.s32.totalorder %s1808_s14, %s1808_s14 }
  0x44   : > { %p1430_p0 = scmp.ne.s32.totalorder %s1808_s14, %s1429_s10  ;;  %p1438_p9 = scmp.lt.s32.totalorder %s1429_s10, %s1429_s10 }
  0x46   : > { %p1432_p2 = pnand %p1430_p0, %p1818_p8  ;;  %p1439_p4 = por %p1438_p9, %p1437_p7 }
  0x48   : > { %p1433_p5 = pneg %p1432_p2 }
  0x4a   : > { %p1440_p10 = pnand %p1439_p4, %p1433_p5 }
  0x4c   : > { %1443 = shalt.err (!%p1440_p10)
}
  0x4d   : > { %1290 = dma.hbm_to_vmem [thread:$0]  (!%p1804_p6), %s2244_s3, 32, %s1808_s14, [#allocation9]  }
  0x4e   : > { %s1118_s13 = sadd.s32 4294967294, %s1702_s30   ;;  %s1867_s16 = sadd.s32 1, %s1702_s30  }
  0x4f   : > { %2245 = sst [smem:[#allocation27_spill]] %s1867_s16  ;;  %s35_s17 = ssub.s32 %s1702_s30, %s1867_s16 }
  0x50   : > { %s38_s18 = sadd.s32 1, %s1698_s29  ;;  %p36_p11 = scmp.eq.s32.totalorder %s35_s17, 0 }
  0x51   : > { %p45_p12 = scmp.ne.s32.totalorder %s1698_s29, %s1694_s28  ;;  %p46_p13 = scmp.eq.s32.totalorder %s1702_s30, 0 }
  0x52   : > { %p51_p0 = scmp.ne.s32.totalorder %s1694_s28, %s1690_s27  ;;  %p206_p7 = scmp.eq.s32.totalorder %s1788_s11, 1 }
  0x53   : > { %s1878_s19 = scalar_select %p36_p11, %s1698_s29, %s38_s18  }
  0x54   : > { %p1880_p2 = por %p46_p13, %p45_p12  ;;  %p1886_p5 = por %p2220_p1, %p51_p0 }
  0x55   : > { %2246 = sst [smem:[#allocation28_spill]] %s1878_s19  ;;  %p212_p9 = scmp.eq.s32.totalorder %s1118_s13, 1 }
  0x56   : > { %s2248_s14 = scalar_select %p1886_p5, 1, 0 }
  0x57   : > { %p1316_p4 = scmp.lt.s32.totalorder %s1702_s30, 2  ;;  %s319_s22 = sand.u32 1, %s1702_s30  }
  0x58   : > { %p1893_p10 = por %p206_p7, %p45_p12  ;;  %p1897_p11 = por %p212_p9, %p51_p0 }
  0x59   : > { %s321_s24 = sand.u32 1, %s1698_s29   ;;  %s1127_s17 = sshll.u32 %s1702_s30, 7 }
  0x5a   : > { %s2249_s23 = scalar_select %p1893_p10, 1, 0 }
  0x5b   : > { %s2250_s10 = scalar_select %p1897_p11, 1, 0 }
  0x5c   : > { %s1902_s9 = sshll.u32 %s321_s24, 3  ;;  %s2252_s0 = sld [smem:[#allocation30_spill]] }
  0x5d   : > { %2251 = sst [smem:[#allocation29_spill]] %s2250_s10  ;;  %s323_s13 = scalar_lea.vmem [#allocation2], %s1902_s9 }
  0x5e   : > { %s330_s1 = sshll.u32 %s323_s13, 4  ;;  %p1913_p12 = pnand %p1316_p4, %p1880_p2  ;;  %s1917_s1 = int_to_ptr.vmem [resolvable:$true] %s330_s1 }
  0x5f   : > { %s1922_s25 = scalar_lea.hbm %s2210_s6, %s1127_s17  ;;  %s1924_s18 = scalar_lea.sflag [#allocation3], %s319_s22 }
  0x60   : > { %s2253_s3 = scalar_select %p1913_p12, 1, 0 }
  0x61   : > { %p2226_p0 = pneg %p1913_p12 }
  0x62   : > { %s1908_s26 = scalar_lea.hbm %s2252_s0, %s1127_s17  ;;  %s1449_s16 = scalar_lea.hbm %s2252_s0, 256 }
  0x63   : > { %s1444_s29 = scalar_lea.hbm %s1908_s26, 128  ;;  %p1450_p9 = scmp.lt.u32.totalorder %s1908_s26, %s2252_s0 }
  0x64   : > { %p1445_p13 = scmp.ne.s32.totalorder %s1908_s26, %s1444_s29  ;;  %p1451_p4 = scmp.lt.u32.totalorder %s1449_s16, %s1444_s29 }
  0x65   : > { %p1453_p11 = scmp.lt.u32.totalorder %s1444_s29, %s1908_s26 }
  0x66   : > { %p1447_p2 = pnand %p2226_p0, %p1445_p13  ;;  %p1452_p1 = por %p1451_p4, %p1450_p9 }
  0x68   : > { %p1448_p7 = pneg %p1447_p2  ;;  %p1454_p10 = por %p1453_p11, %p1452_p1 }
  0x6a   : > { %p1455_p5 = pnand %p1454_p10, %p1448_p7 }
  0x6c   : > { %1458 = shalt.err (!%p1455_p5)
}
  0x6d   : > { %s1459_s19 = scalar_lea.vmem %s1917_s1, 128  ;;  %s1708_s22 = smov [#allocation2]  }
  0x6e   : > { %p1460_p13 = scmp.ne.s32.totalorder %s1917_s1, %s1459_s19  ;;  %s1464_s17 = sshll.u32 %s1708_s22, 4  ;;  %s1465_s17 = int_to_ptr.vmem [resolvable:$false] %s1464_s17 }
  0x6f   : > { %s1466_s30 = scalar_lea.vmem %s1465_s17, 256  ;;  %p1467_p6 = scmp.lt.s32.totalorder %s1917_s1, %s1465_s17 }
  0x70   : > { %p1462_p2 = pnand %p1460_p13, %p2226_p0  ;;  %p1468_p9 = scmp.lt.s32.totalorder %s1466_s30, %s1459_s19 }
  0x72   : > { %p1463_p3 = pneg %p1462_p2  ;;  %p1469_p4 = por %p1468_p9, %p1467_p6 }
  0x74   : > { %p1470_p1 = pnand %p1469_p4, %p1463_p3 }
  0x76   : > { %1473 = shalt.err (!%p1470_p1)
}
  0x77   : > { %1300 = dma.hbm_to_vmem [thread:$0]  (!%p1913_p12), %s1908_s26, 128, %s1917_s1, %s1924_s18  }
  0x78   : > { %s1709_s29 = smov [#allocation7]   ;;  %s1474_s20 = scalar_lea.hbm %s2206_s2, 1024 }
  0x79   : > { %s270_s16 = sshll.u32 %s1709_s29, 4  ;;  %p1475_p6 = scmp.ne.s32.totalorder %s2206_s2, %s1474_s20  ;;  %s271_s16 = int_to_ptr.vmem [resolvable:$true] %s270_s16 }
  0x7a   : > { %p1481_p10 = scmp.lt.u32.totalorder %s1474_s20, %s2206_s2 }
  0x7b   : > { %p1477_p3 = pnand %p1475_p6, %p1818_p8 }
  0x7d   : > { %p1478_p5 = pneg %p1477_p3 }
  0x7f   : > { %p1483_p11 = pnand %p1481_p10, %p1478_p5 }
  0x81   : > { %1486 = shalt.err (!%p1483_p11)
}
  0x82   : > { %s1487_s1 = scalar_lea.vmem %s271_s16, 1024  ;;  %p1495_p9 = scmp.lt.s32.totalorder %s271_s16, %s271_s16 }
  0x83   : > { %p1488_p7 = scmp.ne.s32.totalorder %s271_s16, %s1487_s1  ;;  %p1496_p4 = scmp.lt.s32.totalorder %s1487_s1, %s1487_s1 }
  0x85   : > { %p1490_p13 = pnand %p1488_p7, %p1818_p8  ;;  %p1497_p1 = por %p1496_p4, %p1495_p9 }
  0x87   : > { %p1491_p2 = pneg %p1490_p13 }
  0x89   : > { %p1498_p0 = pnand %p1497_p1, %p1491_p2 }
  0x8b   : > { %1501 = shalt.err (!%p1498_p0)
}
  0x8c   : > { %s1710_s26 = smov 256   ;;  %s1711_s30 = smov 16  }
  0x8d   : > { %p2254_p6 = scmp.ne.s32.totalorder %s2241_s15, 0  ;;  %s1712_s24 = smov [#allocation10]  }
  0x8e   : > { %s294_s20 = sshll.u32 %s1712_s24, 4  ;;  %s1713_s13 = smov [#allocation11]   ;;  %s295_s20 = int_to_ptr.vmem [resolvable:$true] %s294_s20 }
  0x8f   : > { %1287 = dma.hbm_to_vmem [thread:$0]  (!%p2254_p6), %s2206_s2, 1024, %s271_s16, [#allocation6], %s1710_s26, %s1710_s26, %s1711_s30  }
  0x90   : > { %s308_s22 = sshll.u32 %s1713_s13, 4  ;;  %s1502_s1 = scalar_lea.hbm %s2208_s4, 4096  ;;  %s309_s22 = int_to_ptr.vmem [resolvable:$true] %s308_s22 }
  0x91   : > { %p1503_p0 = scmp.ne.s32.totalorder %s2208_s4, %s1502_s1  ;;  %p1509_p10 = scmp.lt.u32.totalorder %s1502_s1, %s2208_s4 }
  0x93   : > { %p1505_p3 = pnand %p1503_p0, %p1818_p8 }
  0x95   : > { %p1506_p5 = pneg %p1505_p3 }
  0x97   : > { %p1511_p11 = pnand %p1509_p10, %p1506_p5 }
  0x99   : > { %1514 = shalt.err (!%p1511_p11)
}
  0x9a   : > { %s1515_s16 = scalar_lea.vmem %s295_s20, 4096  ;;  %p1523_p9 = scmp.lt.s32.totalorder %s295_s20, %s295_s20 }
  0x9b   : > { %p1516_p7 = scmp.ne.s32.totalorder %s295_s20, %s1515_s16  ;;  %p1524_p4 = scmp.lt.s32.totalorder %s1515_s16, %s1515_s16 }
  0x9d   : > { %p1518_p13 = pnand %p1516_p7, %p1818_p8  ;;  %p1525_p1 = por %p1524_p4, %p1523_p9 }
  0x9f   : > { %p1519_p2 = pneg %p1518_p13 }
  0xa1   : > { %p1526_p12 = pnand %p1525_p1, %p1519_p2 }
  0xa3   : > { %1529 = shalt.err (!%p1526_p12)
}
  0xa4   : > { %s2255_s0 = smov 8   ;;  %s2256_s27 = smov 128  }
  0xa5   : > { %1293 = dma.hbm_to_vmem [thread:$0]  (!%p2254_p6), %s2208_s4, 4096, %s295_s20, [#allocation9], %s2256_s27, %s2256_s27, %s2255_s0  }
  0xa6   : > { %s341_s26 = scalar_lea.vmem [#allocation13], %s1902_s9  ;;  %s1530_s24 = scalar_lea.hbm %s2209_s5, 128 }
  0xa7   : > { %s348_s30 = sshll.u32 %s341_s26, 4  ;;  %p1531_p12 = scmp.ne.s32.totalorder %s2209_s5, %s1530_s24  ;;  %s349_s30 = int_to_ptr.vmem [resolvable:$true] %s348_s30 }
  0xa8   : > { %p1537_p5 = scmp.lt.u32.totalorder %s1530_s24, %s2209_s5 }
  0xa9   : > { %p1533_p0 = pnand %p1531_p12, %p1818_p8 }
  0xab   : > { %p1534_p3 = pneg %p1533_p0 }
  0xad   : > { %p1539_p10 = pnand %p1537_p5, %p1534_p3 }
  0xaf   : > { %1542 = shalt.err (!%p1539_p10)
}
  0xb0   : > { %s1543_s20 = scalar_lea.vmem %s309_s22, 128  ;;  %p1551_p2 = scmp.lt.s32.totalorder %s309_s22, %s309_s22 }
  0xb1   : > { %p1544_p11 = scmp.ne.s32.totalorder %s309_s22, %s1543_s20  ;;  %p1552_p9 = scmp.lt.s32.totalorder %s1543_s20, %s1543_s20 }
  0xb3   : > { %p1546_p7 = pnand %p1544_p11, %p1818_p8  ;;  %p1553_p4 = por %p1552_p9, %p1551_p2 }
  0xb5   : > { %p1547_p13 = pneg %p1546_p7 }
  0xb7   : > { %p1554_p1 = pnand %p1553_p4, %p1547_p13 }
  0xb9   : > { %1557 = shalt.err (!%p1554_p1)
}
  0xba   : > { %1296 = dma.hbm_to_vmem [thread:$0]  (!%p2254_p6), %s2209_s5, 128, %s309_s22, [#allocation12]  }
  0xbb   : > { %s1558_s21 = scalar_lea.hbm %s1922_s25, 128  ;;  %p2257_p12 = scmp.ne.s32.totalorder %s2253_s3, 0 }
  0xbc   : > { %p1559_p8 = scmp.ne.s32.totalorder %s1922_s25, %s1558_s21  ;;  %s1563_s15 = scalar_lea.hbm %s2210_s6, 256 }
  0xbd   : > { %p2258_p0 = pneg %p2257_p12  ;;  %p1564_p10 = scmp.lt.u32.totalorder %s1922_s25, %s2210_s6 }
  0xbe   : > { %p1565_p11 = scmp.lt.u32.totalorder %s1563_s15, %s1558_s21  ;;  %p1567_p13 = scmp.lt.u32.totalorder %s1558_s21, %s1922_s25 }
  0xbf   : > { %p1561_p3 = pnand %p1559_p8, %p2258_p0 }
  0xc0   : > { %p1566_p7 = por %p1565_p11, %p1564_p10 }
  0xc1   : > { %p1562_p5 = pneg %p1561_p3 }
  0xc2   : > { %p1568_p2 = por %p1567_p13, %p1566_p7 }
  0xc4   : > { %p1569_p6 = pnand %p1568_p2, %p1562_p5 }
  0xc6   : > { %1572 = shalt.err (!%p1569_p6)
}
  0xc7   : > { %s1573_s22 = scalar_lea.vmem %s349_s30, 128  ;;  %p2259_p4 = pmov %p2258_p0 }
  0xc8   : > { %p1574_p9 = scmp.ne.s32.totalorder %s349_s30, %s1573_s22  ;;  %s1714_s26 = smov [#allocation13]  }
  0xc9   : > { %s1578_s29 = sshll.u32 %s1714_s26, 4  ;;  %s1579_s29 = int_to_ptr.vmem [resolvable:$false] %s1578_s29 }
  0xca   : > { %p1576_p1 = pnand %p1574_p9, %p2259_p4  ;;  %s1580_s10 = scalar_lea.vmem %s1579_s29, 256 }
  0xcb   : > { %p1581_p0 = scmp.lt.s32.totalorder %s349_s30, %s1579_s29  ;;  %p1582_p3 = scmp.lt.s32.totalorder %s1580_s10, %s1573_s22 }
  0xcc   : > { %p1577_p8 = pneg %p1576_p1 }
  0xcd   : > { %p1583_p10 = por %p1582_p3, %p1581_p0 }
  0xcf   : > { %p1584_p11 = pnand %p1583_p10, %p1577_p8 }
  0xd1   : > { %1587 = shalt.err (!%p1584_p11)
}
  0xd2   : > { %1303 = dma.hbm_to_vmem [thread:$0]  (!%p2257_p12), %s1922_s25, 128, %s349_s30, %s1924_s18  }
  0xd3   : > { %p2260_p5 = scmp.ne.s32.totalorder %s2240_s12, 0 }
  0xd4   : > { %s359_s24 = sand.u32 (!%p2260_p5), 1, %s1788_s11   ;;  %s2034_s13 = sand.u32 (!%p2260_p5), 1, %s1694_s28  }
  0xd5   : > { %357 = sbr.rel (%p2260_p5) target bundleno = 2112 (0x840), region = 48  ;;  %s2037_s19 = sshll.u32 (!%p2260_p5), %s2034_s13, 3 }
  0xd6   : > { %s360_s17 = scalar_lea.sflag (!%p2260_p5), [#allocation3], %s359_s24  ;;  %s363_s1 = scalar_lea.vmem (!%p2260_p5), [#allocation2], %s2037_s19 }
  0xd7   : > { %p2261_p7 = scmp.ne.s32.totalorder (!%p2260_p5), %s2248_s14, 0 }
  0xdc   : > { %1661 = dma.done.wait (%p2261_p7), %s360_s17, 128  }
  0xdd   : > { %1663 = vsyncadd (%p2261_p7), %s360_s17, 4294967168  ;;  %p2262_p12 = scmp.eq.s32.totalorder %s1788_s11, 0 }
  0xdf   : > { %1665 = dma.done.wait (%p2262_p12), [#allocation6], 1536   ;;  %p2263_p13 = pmov %p2262_p12 }
  0xe0   : > { %p2264_p2 = pmov %p2262_p12 }
  0xe1   : > { %1667 = vsyncadd (%p2263_p13), [#allocation6], 4294965760 }
  0xe2   : > { %1669 = dma.done.wait (%p2264_p2), [#allocation9], 4128   ;;  %p2265_p6 = pmov %p2264_p2 }
  0xe3   : > { %p2266_p9 = pmov %p2264_p2 }
  0xe4   : > { %1671 = vsyncadd (%p2265_p6), [#allocation9], 4294963168 }
  0xe5   : > { %1673 = dma.done.wait (%p2266_p9), [#allocation12], 128   ;;  %p2267_p4 = pmov %p2264_p2 }
  0xe6   : > { %s392_s3 = scalar_lea.vmem [#allocation13], %s2037_s19 }
  0xe7   : > { %1675 = vsyncadd (%p2267_p4), [#allocation12], 4294967168 }
  0xe8   : > { %1677 = dma.done.wait (%p2261_p7), %s360_s17, 128  }
  0xe9   : > { %1679 = vsyncadd (%p2261_p7), %s360_s17, 4294967168  ;;  %v1715_v0 = vmov 0.0|0.0   ;;  %vm1716_vm0 = vmmov 0   ;;  %v1717_v1 = vmov 0.0   ;;  %v435_v2 = vld [vmem:[#allocation5] sm:$0xff]  ;;  %v436_v3 = vld [vmem:[#allocation5 + $0x8] sm:$0xff]  ;;  %v531_v40 = vlaneseq }
  0xea   : > { %1207 = vmatprep.subr.bf16.mxu0 %v1715_v0  ;;  %1199 = vmatprep.mubr.msk.f32.mxu0 %vm1716_vm0, %v1717_v1  ;;  %v437_v4 = vld [vmem:[#allocation5 + $0x10] sm:$0xff]  ;;  %v1208_v5 = vpack.c.bf16 %v436_v3, %v435_v2  ;;  %v438_v6 = vld [vmem:[#allocation5 + $0x18] sm:$0xff]  ;;  %vm439_vm1 = vcmask 261120   ;;  %vm513_vm2 = vcmask 64512   ;;  %s2071_s12 = scalar_lea.vmem [#allocation15], %s2034_s13  ;;  %vm889_vm3 = vcmask 57344  }
  0xeb   : > { %v1211_v7 = vpack.c.bf16 %v438_v6, %v437_v4  ;;  %v434_v8 = vld [vmem:[%s363_s1] sm:$0xff]  ;;  %881 = vst [vmem:[%s2071_s12] sm:$0x1] %v1717_v1  ;;  %v554_v28 = vld [vmem:[#allocation7 + $0x8] sm:$0xff]  ;;  %v553_v30 = vld [vmem:[#allocation7] sm:$0xff]  ;;  %v2086_v41 = vand.u32 127, %v531_v40  ;;  %vm841_vm13 = vcmask 15360  }
  0xec   : > { %1209 = vmatpush3.bf16.msra.mxu0 %v1208_v5  ;;  %v556_v29 = vld [vmem:[#allocation7 + $0x18] sm:$0xff]  ;;  %v555_v32 = vld [vmem:[#allocation7 + $0x10] sm:$0xff]  ;;  %v558_v33 = vld [vmem:[#allocation7 + $0x28] sm:$0xff]  ;;  %s427_s14 = scalar_lea.vmem [#allocation14], %s2037_s19  ;;  %s1719_s25 = smov 8  }
  0xed   : > { %1210 = vmatprep.subr.bf16.mxu0 %v1715_v0  ;;  %v1213_v31 = vpack.c.bf16 %v556_v29, %v554_v28  ;;  %v560_v34 = vld [vmem:[#allocation7 + $0x38] sm:$0xff]  ;;  %v1215_v35 = vpack.c.bf16 %v555_v32, %v553_v30  ;;  %v557_v37 = vld [vmem:[#allocation7 + $0x20] sm:$0xff]  ;;  %v559_v38 = vld [vmem:[#allocation7 + $0x30] sm:$0xff]  ;;  %s1145_s18 = sshll.u32 %s1788_s11, 7  ;;  %s2268_s9 = sld [smem:[#allocation33_spill]] }
  0xee   : > { %v1217_v36 = vpack.c.bf16 %v560_v34, %v558_v33  ;;  %v1219_v39 = vpack.c.bf16 %v559_v38, %v557_v37  ;;  %v681_v47 = vld [vmem:[#allocation10 + $0x80] sm:$0xff]  ;;  %v682_v48 = vld [vmem:[#allocation10 + $0x88] sm:$0xff]  ;;  %v683_v57 = vld [vmem:[#allocation10 + $0x90] sm:$0xff]  ;;  %s939_s21 = sshll.u32 %s427_s14, 4  ;;  %s922_s0 = scalar_lea.sflag [#allocation4], %s2034_s13  ;;  %s940_s21 = int_to_ptr.vmem [resolvable:$true] %s939_s21 }
  0xef   : > { %v665_v49 = vld [vmem:[#allocation10] sm:$0xff]  ;;  %v1221_v50 = vpack.c.bf16 %v682_v48, %v681_v47  ;;  %v666_v51 = vld [vmem:[#allocation10 + $0x8] sm:$0xff]  ;;  %v684_v58 = vld [vmem:[#allocation10 + $0x98] sm:$0xff]  ;;  %s1588_s27 = scalar_lea.vmem %s940_s21, 128  ;;  %p2269_p8 = scmp.ne.s32.totalorder %s2249_s23, 0 }
  0xf0   : > { %1212 = vmatpush3.bf16.msra.mxu0 %v1211_v7  ;;  %v1223_v52 = vpack.c.bf16 %v666_v51, %v665_v49  ;;  %v1225_v59 = vpack.c.bf16 %v684_v58, %v683_v57  ;;  %v667_v60 = vld [vmem:[#allocation10 + $0x10] sm:$0xff]  ;;  %v668_v61 = vld [vmem:[#allocation10 + $0x18] sm:$0xff]  ;;  %v685_v63 = vld [vmem:[#allocation10 + $0xa0] sm:$0xff]  ;;  %v644_v58 = vadd.s32 128, %v2086_v41  ;;  %p1589_p1 = scmp.ne.s32.totalorder %s940_s21, %s1588_s27  ;;  %s1720_s15 = smov [#allocation14]  }
  0xf1   : > { %1214 = vmatprep.subr.bf16.mxu0 %v1213_v31  ;;  %1222 = vmatprep.subr.bf16.mxu1 %v1221_v50  ;;  %v1227_v62 = vpack.c.bf16 %v668_v61, %v667_v60  ;;  %v686_v0 = vld [vmem:[#allocation10 + $0xa8] sm:$0xff]  ;;  %v669_v3 = vld [vmem:[#allocation10 + $0x20] sm:$0xff]  ;;  %v695_v34 = vld [vmem:[#allocation10 + $0xf0] sm:$0xff]  ;;  %s1592_s7 = sshll.u32 %s1720_s15, 4  ;;  %s1593_s7 = int_to_ptr.vmem [resolvable:$false] %s1592_s7 }
  0xf2   : > { %1224 = vmatpush3.bf16.msra.mxu1 %v1223_v52  ;;  %v1229_v2 = vpack.c.bf16 %v686_v0, %v685_v63  ;;  %v670_v4 = vld [vmem:[#allocation10 + $0x28] sm:$0xff]  ;;  %v697_v5 = vld [vmem:[#allocation11] sm:$0xff]  ;;  %v679_v38 = vld [vmem:[#allocation10 + $0x70] sm:$0xff]  ;;  %p1590_p0 = pnand %p1589_p1, %p2269_p8  ;;  %s1594_s8 = scalar_lea.vmem %s1593_s7, 256 }
  0xf3   : > { %1200 = vmatmul.mubr.msk.f32.vlgmr.msra.gmra.mrb[0].mxu0 %vm439_vm1, %v434_v8  ;;  %1226 = vmatprep.subr.bf16.mxu1 %v1225_v59  ;;  %v1231_v6 = vpack.c.bf16 %v670_v4, %v669_v3  ;;  %v693_v28 = vld [vmem:[#allocation10 + $0xe0] sm:$0xff]  ;;  %v694_v29 = vld [vmem:[#allocation10 + $0xe8] sm:$0xff]  ;;  %v561_v48 = vld [vmem:[#allocation8] sm:$0x3]  ;;  %s2129_s16 = scalar_lea.hbm %s2268_s9, %s1145_s18  ;;  %p1595_p10 = scmp.lt.s32.totalorder %s940_s21, %s1593_s7 }
  0xf4   : > { %637 = vmatprep.mubr.f32.mxu0 %v1717_v1  ;;  %1216 = vmatpush1.bf16.msra.mxu0 %v1215_v35  ;;  %v1245_v31 = vpack.c.bf16 %v694_v29, %v693_v28  ;;  %v677_v32 = vld [vmem:[#allocation10 + $0x60] sm:$0xff]  ;;  %v678_v33 = vld [vmem:[#allocation10 + $0x68] sm:$0xff]  ;;  %v696_v35 = vld [vmem:[#allocation10 + $0xf8] sm:$0xff]  ;;  %p1591_p3 = pneg %p1590_p0  ;;  %p1596_p11 = scmp.lt.s32.totalorder %s1594_s8, %s1588_s27 }
  0xf5   : > { %1218 = vmatprep.subr.bf16.mxu0 %v1217_v36  ;;  %v1247_v36 = vpack.c.bf16 %v678_v33, %v677_v32  ;;  %v1249_v37 = vpack.c.bf16 %v696_v35, %v695_v34 }
  0xf6   : > { %1228 = vmatpush3.bf16.msra.mxu1 %v1227_v62  ;;  %p1597_p5 = por %p1596_p11, %p1595_p10 }
  0xf7   : > { %1230 = vmatprep.subr.bf16.mxu1 %v1229_v2 }
  0xf8   : > { %1220 = vmatpush1.bf16.msra.mxu0 %v1219_v39  ;;  %v680_v39 = vld [vmem:[#allocation10 + $0x78] sm:$0xff]  ;;  %p1598_p7 = pnand %p1597_p5, %p1591_p3 }
  0xf9   : > { %1202 = vmatprep.subr.mxu0 %v1717_v1 }
  0xfa   : > { %1232 = vmatpush3.bf16.msra.mxu1 %v1231_v6 }
  0xfb   : > { %1141 = vmatmul.mubr.msk.f32.vlgmr.msra.gmra.mrb[2].mxu0 %vm439_vm1, %v434_v8 }
  0xfc   : > { %1204 = vmatprep.mubr.msk.f32.mxu0 %vm1716_vm0, %v1717_v1  ;;  %1203 = vmatpush3.msra.mxu0 %v697_v5 }
 0x1c6   : > { %v509_v9 = vpop.f32.mrb[0].mxu0 }
 0x1c7   : > { %v1201_v10 = vpop.f32.mrb[1].mxu0  ;;  %v514_v11 = vsel %vm513_vm2, %v509_v9, -inf }
 0x1c8   : > { %515 = vmax.xlane.f32.xlu0 %v514_v11  ;;  %v688_v10 = vld [vmem:[#allocation10 + $0xb8] sm:$0xff] }
 0x1ce   : > { %v639_v7 = vpop.f32.mrb[2].mxu0 }
 0x1cf   : > { %v641_v8 = vpop.f32.mrb[3].mxu0 }
 0x255   : > { %v2066_v12 = vpop.xlane.xlu0 %515 }
 0x256   : > { %v517_v13 = vsub.f32 %v509_v9, %v2066_v12  ;;  %v687_v9 = vld [vmem:[#allocation10 + $0xb0] sm:$0xff] }
 0x257   : > { %v1233_v11 = vpack.c.bf16 %v688_v10, %v687_v9 }
 0x258   : > { %v518_v14 = vmul.f32 1.442695, %v517_v13  ;;  %v671_v13 = vld [vmem:[#allocation10 + $0x30] sm:$0xff] }
 0x259   : > { %1234 = vmatprep.subr.bf16.mxu1 %v1233_v11 }
 0x25a   : > { %1370 = vpow2.f32 %v518_v14  ;;  %v672_v14 = vld [vmem:[#allocation10 + $0x38] sm:$0xff] }
 0x264   : > { %v1371_v15 = vpop.eup %1370 }
 0x265   : > { %v520_v16 = vsel %vm513_vm2, %v1371_v15, 0.0 }
 0x266   : > { %521 = vadd.xlane.f32.xlu0 %v520_v16  ;;  %v689_v16 = vld [vmem:[#allocation10 + $0xc0] sm:$0xff] }
 0x2f3   : > { %v2075_v17 = vpop.xlane.xlu0 %521 }
 0x2f4   : > { %1372 = vrcp.f32 %v2075_v17 }
 0x2fe   : > { %v1373_v18 = vpop.eup %1372 }
 0x2ff   : > { %v524_v19 = vmul.f32 %v1373_v18, %v1371_v15  ;;  %v1235_v15 = vpack.c.bf16 %v672_v14, %v671_v13  ;;  %v690_v18 = vld [vmem:[#allocation10 + $0xc8] sm:$0xff] }
 0x301   : > { %v528_v20 = vsel %vm513_vm2, %v524_v19, -inf  ;;  %v882_v21 = vsel %vm513_vm2, %v524_v19, 0.0  ;;  %1236 = vmatpush3.bf16.msra.mxu1 %v1235_v15 }
 0x302   : > { %v883_v22 = vrot.slane %v882_v21, 4  ;;  %529 = vmax.xlane.f32.xlu1 %v528_v20  ;;  %v673_v20 = vld [vmem:[#allocation10 + $0x40] sm:$0xff] }
 0x304   : > { %v884_v23 = vadd.f32 %v883_v22, %v882_v21  ;;  %v674_v21 = vld [vmem:[#allocation10 + $0x48] sm:$0xff] }
 0x305   : > { %v1239_v22 = vpack.c.bf16 %v674_v21, %v673_v20 }
 0x306   : > { %v885_v24 = vrot.slane %v884_v23, 2 }
 0x308   : > { %v886_v25 = vadd.f32 %v885_v24, %v884_v23  ;;  %v691_v23 = vld [vmem:[#allocation10 + $0xd0] sm:$0xff]  ;;  %v692_v24 = vld [vmem:[#allocation10 + $0xd8] sm:$0xff] }
 0x30a   : > { %v887_v26 = vrot.slane %v886_v25, 1 }
 0x30c   : > { %v888_v27 = vadd.f32 %v887_v26, %v886_v25  ;;  %v675_v25 = vld [vmem:[#allocation10 + $0x50] sm:$0xff]  ;;  %v1241_v26 = vpack.c.bf16 %v692_v24, %v691_v23 }
 0x30d   : > { %v857_v24 = vld [vmem:[%s392_s3] sm:$0xff] }
 0x30e   : > { %890 = vst.msk [vmem:[%s2071_s12] sm:$0x1] %vm889_vm3, %v888_v27  ;;  %v676_v27 = vld [vmem:[#allocation10 + $0x58] sm:$0xff] }
 0x30f   : > { %v1243_v30 = vpack.c.bf16 %v676_v27, %v675_v25 }
 0x38f   : > { %v2088_v42 = vpop.xlane.xlu1 %529 }
 0x390   : > { %vm533_vm4 = vcmp.ge.f32.partialorder %v524_v19, %v2088_v42  ;;  %v1237_v19 = vpack.c.bf16 %v690_v18, %v689_v16  ;;  %v1718_v18 = vmov 0  }
 0x391   : > { %v534_v43 = vsel %vm533_vm4, %v2086_v41, 8  ;;  %1369 = vset.pattern.permute.xlu0 %v1718_v18 }
 0x392   : > { %v535_v44 = vsel %vm513_vm2, %v534_v43, 2147483647  ;;  %1238 = vmatprep.subr.bf16.mxu1 %v1237_v19  ;;  %v1251_v43 = vpack.c.bf16 %v680_v39, %v679_v38 }
 0x393   : > { %v537_v45 = vshra.s32 %v535_v44, 16  ;;  %v536_v53 = vand.u32 65535, %v535_v44  ;;  %1240 = vmatpush3.bf16.msra.mxu1 %v1239_v22  ;;  %v564_v44 = vshrl.u32 %v531_v40, 7 }
 0x394   : > { %1242 = vmatprep.subr.bf16.mxu1 %v1241_v26  ;;  %v853_v26 = vsub.f32 1.0, %v2088_v42 }
 0x395   : > { %v539_v46 = vcvt.s32.f32 %v537_v45  ;;  %v538_v55 = vcvt.s32.f32 %v536_v53  ;;  %v569_v49 = vsub.s32 1, %v564_v44 }
 0x396   : > { %v854_v28 = vadd.f32 %v853_v26, %v2088_v42 }
 0x397   : > { %540 = vmin.xlane.f32.xlu1 %v539_v46  ;;  %1244 = vmatpush3.bf16.msra.mxu1 %v1243_v30 }
 0x398   : > { %1246 = vmatprep.subr.bf16.mxu1 %v1245_v31 }
 0x39b   : > { %1248 = vmatpush3.bf16.msra.mxu1 %v1247_v36 }
 0x39c   : > { %1250 = vmatprep.subr.bf16.mxu1 %v1249_v37 }
 0x39f   : > { %1252 = vmatpush3.bf16.msra.mxu1 %v1251_v43 }
 0x424   : > { %v2093_v54 = vpop.xlane.xlu1 %540 }
 0x425   : > { %vm542_vm5 = vcmp.eq.f32.partialorder %v539_v46, %v2093_v54  ;;  %v547_v45 = vcvt.f32.s32 %v2093_v54  ;;  %v565_v46 = vsub.s32 0, %v564_v44 }
 0x426   : > { %v543_v56 = vsel %vm542_vm5, %v538_v55, inf  ;;  %v570_v55 = vrot.slane %v561_v48, %v569_v49 }
 0x427   : > { %544 = vmin.xlane.f32.xlu0 %v543_v56  ;;  %v548_v50 = vshll.u32 %v547_v45, 16  ;;  %v566_v53 = vrot.slane %v561_v48, %v565_v46 }
 0x428   : > { %v642_v54 = vadd.f32 %v641_v8, %v570_v55 }
 0x429   : > { %v640_v40 = vadd.f32 %v639_v7, %v566_v53 }
 0x4b4   : > { %v545_v47 = vpop.xlane.xlu0 %544 }
 0x4b5   : > { %v546_v51 = vcvt.f32.s32 %v545_v47 }
 0x4b7   : > { %v549_v52 = vadd.s32 %v548_v50, %v546_v51 }
 0x4b9   : > { %vm550_vm6 = vcmp.eq.s32.totalorder %v2086_v41, %v549_v52  ;;  %v645_v56 = vmul.u32 32, %v549_v52 }
 0x4ba   : > { %v2100_v57 = vsel %vm550_vm6, 1.0, %v1717_v1 }
 0x4bb   : > { %v648_v59 = vadd.s32 32, %v645_v56  ;;  %1205 = vmatmul.mubr.msk.f32.vlgmr.msra.gmra.mrb[4].mxu0 %vm513_vm2, %v2100_v57  ;;  %vm646_vm7 = vcmp.ge.s32.totalorder %v2086_v41, %v645_v56  ;;  %vm647_vm11 = vcmp.ge.s32.totalorder %v644_v58, %v645_v56  ;;  %v891_v42 = vsel %vm513_vm2, %v2100_v57, 0.0 }
 0x4bc   : > { %v892_v38 = vrot.slane %v891_v42, 4 }
 0x4bd   : > { %vm649_vm8 = vcmp.lt.s32.totalorder %v2086_v41, %v648_v59  ;;  %vm650_vm9 = vcmp.lt.s32.totalorder %v644_v58, %v648_v59 }
 0x4be   : > { %vm651_vm10 = vmand %vm646_vm7, %vm649_vm8  ;;  %v893_v44 = vadd.f32 %v892_v38, %v891_v42 }
 0x4bf   : > { %v653_v60 = vsel %vm651_vm10, %v640_v40, 0.0  ;;  %vm652_vm12 = vmand %vm647_vm11, %vm650_vm9 }
 0x4c0   : > { %v657_v61 = vmul.f32 0.70710677, %v653_v60  ;;  %v654_v62 = vsel %vm652_vm12, %v642_v54, 0.0  ;;  %v655_v3 = vmul.f32 0.5, %v653_v60  ;;  %v894_v46 = vrot.slane %v893_v44, 2 }
 0x4c1   : > { %v658_v63 = vmul.f32 0.70710677, %v654_v62  ;;  %v656_v5 = vmul.f32 0.5, %v654_v62 }
 0x4c2   : > { %1374 = verf.f32 %v657_v61 }
 0x4c3   : > { %1376 = verf.f32 %v658_v63 }
 0x4cc   : > { %v1375_v0 = vpop.eup %1374 }
 0x4cd   : > { %v1377_v2 = vpop.eup %1376  ;;  %v661_v4 = vadd.f32 1.0, %v1375_v0 }
 0x4ce   : > { %v662_v6 = vadd.f32 1.0, %v1377_v2 }
 0x4cf   : > { %v663_v7 = vmul.f32 %v661_v4, %v655_v3 }
 0x4d0   : > { %v664_v8 = vmul.f32 %v662_v6, %v656_v5 }
 0x4d2   : > { %835 = vmatprep.mubr.f32.mxu1 %v664_v8 }
 0x4d3   : > { %836 = vmatmul.mubr.f32.vlgmr.msra.gmra.mrb[0].mxu1 %v663_v7 }
 0x58e   : > { %v767_v9 = vpop.f32.mrb[4].mxu0 }
 0x58f   : > { %v1206_v10 = vpop.f32.mrb[5].mxu0 }
 0x5a6   : > { %v1188_v11 = vpop.f32.mrb[0].mxu1 }
 0x5a7   : > { %v1189_v13 = vpop.f32.mrb[1].mxu1 }
 0x5a8   : > { %v1190_v14 = vadd.f32 %v1189_v13, %v1188_v11 }
 0x5aa   : > { %v838_v15 = vadd.f32 %v1190_v14, %v767_v9 }
 0x5ac   : > { %v842_v16 = vsel %vm841_vm13, %v838_v15, -inf }
 0x5ad   : > { %843 = vmax.xlane.f32.xlu1 %v842_v16 }
 0x63a   : > { %v844_v19 = vpop.xlane.xlu1 %843 }
 0x63b   : > { %v845_v20 = vsub.f32 %v838_v15, %v844_v19 }
 0x63d   : > { %v846_v21 = vmul.f32 1.442695, %v845_v20 }
 0x63f   : > { %1378 = vpow2.f32 %v846_v21 }
 0x649   : > { %v1379_v22 = vpop.eup %1378 }
 0x64a   : > { %v848_v23 = vsel %vm841_vm13, %v1379_v22, 0.0 }
 0x64b   : > { %849 = vadd.xlane.f32.xlu0 %v848_v23 }
 0x661   : > { %859 = vperm.xlu0 %1369, %v857_v24  }
 0x6d8   : > { %v850_v25 = vpop.xlane.xlu0 %849 }
 0x6d9   : > { %1380 = vrcp.f32 %v850_v25 }
 0x6e0   : > { %v860_v35 = vpop.permute.xlu0 %859 }
 0x6e1   : > { %vm861_vm14 = vcmp.eq.s32.totalorder %v2086_v41, %v860_v35  ;;  %v895_v41 = vadd.f32 %v894_v46, %v893_v44 }
 0x6e2   : > { %v1143_v36 = vsel %vm861_vm14, 1.0, %v1717_v1 }
 0x6e3   : > { %v1381_v27 = vpop.eup %1380  ;;  %v896_v47 = vrot.slane %v895_v41, 1 }
 0x6e4   : > { %v852_v29 = vmul.f32 %v1381_v27, %v1379_v22 }
 0x6e5   : > { %v897_v48 = vadd.f32 %v896_v47, %v895_v41 }
 0x6e6   : > { %v855_v30 = vmul.f32 %v854_v28, %v852_v29 }
 0x6e8   : > { %v864_v31 = vsel %vm841_vm13, %v855_v30, -inf  ;;  %856 = vst.msk [vmem:[%s427_s14] sm:$0xff] %vm841_vm13, %v855_v30  ;;  %v876_v43 = vmul.f32 %v1143_v36, %v855_v30 }
 0x6e9   : > { %865 = vmax.xlane.f32.xlu1 %v864_v31 }
 0x6ea   : > { %v877_v45 = vsel %vm841_vm13, %v876_v43, 0.0 }
 0x776   : > { %v2116_v32 = vpop.xlane.xlu1 %865 }
 0x777   : > { %v867_v33 = vsub.f32 %v855_v30, %v2116_v32 }
 0x779   : > { %v868_v34 = vmul.f32 1.442695, %v867_v33 }
 0x77b   : > { %1382 = vpow2.f32 %v868_v34 }
 0x785   : > { %v1383_v37 = vpop.eup %1382 }
 0x786   : > { %v870_v39 = vsel %vm841_vm13, %v1383_v37, 0.0 }
 0x787   : > { %871 = vadd.xlane.f32.xlu1 %v870_v39 }
 0x78b   : > { %878 = vadd.xlane.f32.xlu1 %v877_v45 }
 0x79c   : > { %899 = vrot.lane.b32.xlu1 %v897_v48, %s1719_s25 }
 0x79d   : > { %1601 = shalt.err (!%p1598_p7)
}
 0x79e   : > { %s1602_s22 = scalar_lea.hbm %s2129_s16, 128  ;;  %s1606_s10 = scalar_lea.hbm %s2268_s9, 256 }
 0x79f   : > { %p1603_p12 = scmp.ne.s32.totalorder %s2129_s16, %s1602_s22  ;;  %p1607_p6 = scmp.lt.u32.totalorder %s2129_s16, %s2268_s9 }
 0x7a0   : > { %p1608_p9 = scmp.lt.u32.totalorder %s1606_s10, %s1602_s22  ;;  %p1610_p1 = scmp.lt.u32.totalorder %s1602_s22, %s2129_s16 }
 0x7a1   : > { %p1604_p13 = pnand %p1603_p12, %p2269_p8 }
 0x7a2   : > { %p1609_p4 = por %p1608_p9, %p1607_p6 }
 0x7a3   : > { %p1605_p2 = pneg %p1604_p13 }
 0x7a4   : > { %p1611_p0 = por %p1610_p1, %p1609_p4 }
 0x7a6   : > { %p1612_p3 = pnand %p1611_p0, %p1605_p2 }
 0x7a8   : > { %1615 = shalt.err (!%p1612_p3)
}
 0x7a9   : > { %1277 = dma.vmem_to_hbm [thread:$0]  (%p2269_p8), %s940_s21, 128, %s2129_s16, %s922_s0   ;;  %1384 = vlog2.f32 %v2075_v17  ;;  %vm902_vm15 = vcmask 122944   ;;  %vm911_vm0 = vcmask 131200   ;;  %vm919_vm1 = vcmask 139400  }
 0x7aa   : > { %s1146_s17 = sshll.u32 %s1788_s11, 4  ;;  %s952_s1 = sshll.u32 %s2071_s12, 4  ;;  %s2161_s1 = int_to_ptr.vmem [resolvable:$true] %s952_s1 }
 0x7ab   : > { %s2270_s25 = sld [smem:[#allocation34_spill]]  ;;  %s927_s30 = scalar_lea.sflag [#allocation16], %s2034_s13 }
 0x7ac   : > { %s1616_s20 = scalar_lea.vmem %s2161_s1, 16  ;;  %s1721_s11 = smov [#allocation15]  }
 0x7ad   : > { %p1617_p10 = scmp.ne.s32.totalorder %s2161_s1, %s1616_s20  ;;  %s1620_s16 = sshll.u32 %s1721_s11, 4  ;;  %s1621_s16 = int_to_ptr.vmem [resolvable:$false] %s1620_s16 }
 0x7ae   : > { %s1622_s21 = scalar_lea.vmem %s1621_s16, 32  ;;  %p1623_p7 = scmp.lt.s32.totalorder %s2161_s1, %s1621_s16 }
 0x7af   : > { %p1618_p11 = pnand %p1617_p10, %p2269_p8  ;;  %p1624_p12 = scmp.lt.s32.totalorder %s1622_s21, %s1616_s20 }
 0x7b1   : > { %s2159_s18 = scalar_lea.hbm %s2270_s25, %s1146_s17  ;;  %p1619_p5 = pneg %p1618_p11 }
 0x7b2   : > { %p1625_p13 = por %p1624_p12, %p1623_p7 }
 0x7b3   : > { %v1385_v1 = vpop.eup %1384 }
 0x7b4   : > { %v526_v49 = vmul.f32 0.6931472, %v1385_v1  ;;  %p1626_p2 = pnand %p1625_p13, %p1619_p5 }
 0x7b6   : > { %v527_v50 = vadd.f32 %v526_v49, %v2066_v12 }
 0x7b8   : > { %v904_v51 = vmul.f32 %v527_v50, %v527_v50 }
 0x7ba   : > { %v905_v52 = vrot.slane %v904_v51, 4 }
 0x7bc   : > { %v906_v53 = vadd.f32 %v905_v52, %v904_v51 }
 0x7be   : > { %v907_v55 = vrot.slane %v906_v53, 2 }
 0x7c0   : > { %v908_v56 = vadd.f32 %v907_v55, %v906_v53 }
 0x7c2   : > { %v909_v58 = vrot.slane %v908_v56, 1 }
 0x7c4   : > { %v910_v17 = vadd.f32 %v909_v58, %v908_v56 }
 0x814   : > { %v872_v57 = vpop.xlane.xlu1 %871 }
 0x815   : > { %1386 = vlog2.f32 %v872_v57 }
 0x818   : > { %v879_v40 = vpop.xlane.xlu1 %878 }
 0x81c   : > { %v900_v59 = vpop.permute.xlu1 %899 }
 0x81d   : > { %903 = vst.msk [vmem:[%s2071_s12] sm:$0x1] %vm902_vm15, %v900_v59 }
 0x81e   : > { %912 = vst.msk [vmem:[%s2071_s12] sm:$0x1] %vm911_vm0, %v910_v17 }
 0x81f   : > { %v1387_v54 = vpop.eup %1386 }
 0x820   : > { %v874_v12 = vmul.f32 0.6931472, %v1387_v54 }
 0x822   : > { %v875_v60 = vadd.f32 %v874_v12, %v2116_v32 }
 0x824   : > { %v880_v61 = vsub.f32 %v875_v60, %v879_v40 }
 0x826   : > { %v913_v62 = vrot.slane %v880_v61, 4 }
 0x828   : > { %v914_v63 = vadd.f32 %v913_v62, %v880_v61 }
 0x82a   : > { %v915_v0 = vrot.slane %v914_v63, 2 }
 0x82c   : > { %v916_v2 = vadd.f32 %v915_v0, %v914_v63 }
 0x82e   : > { %v917_v3 = vrot.slane %v916_v2, 1 }
 0x830   : > { %v918_v4 = vadd.f32 %v917_v3, %v916_v2 }
 0x832   : > { %920 = vst.msk [vmem:[%s2071_s12] sm:$0x1] %vm919_vm1, %v918_v4 }
 0x833   : > { %1629 = shalt.err (!%p1626_p2)
}
 0x834   : > { %s1630_s13 = scalar_lea.hbm %s2159_s18, 16  ;;  %s1634_s27 = scalar_lea.hbm %s2270_s25, 32 }
 0x835   : > { %p1631_p6 = scmp.ne.s32.totalorder %s2159_s18, %s1630_s13  ;;  %p1635_p1 = scmp.lt.u32.totalorder %s2159_s18, %s2270_s25 }
 0x836   : > { %p1636_p0 = scmp.lt.u32.totalorder %s1634_s27, %s1630_s13  ;;  %p1638_p10 = scmp.lt.u32.totalorder %s1630_s13, %s2159_s18 }
 0x837   : > { %p1632_p9 = pnand %p1631_p6, %p2269_p8 }
 0x838   : > { %p1637_p3 = por %p1636_p0, %p1635_p1 }
 0x839   : > { %p1633_p4 = pneg %p1632_p9 }
 0x83a   : > { %p1639_p11 = por %p1638_p10, %p1637_p3 }
 0x83c   : > { %p1640_p5 = pnand %p1639_p11, %p1633_p4 }
 0x83e   : > { %1643 = shalt.err (!%p1640_p5)
}
 0x83f   : > { %1278 = dma.vmem_to_hbm [thread:$0]  (%p2269_p8), %s2161_s1, 16, %s2159_s18, %s927_s30  }
 0x840 PF: > { %s2271_s8 = sld [smem:[#allocation24_spill]]  ;;  %s2272_s22 = sld [smem:[#allocation29_spill]] }
 0x841   : > { %s2273_s26 = sld [smem:[#allocation26_spill]] }
 0x846   : > { %s964_s29 = sand.u32 1, %s2271_s8   ;;  %p2274_p7 = scmp.ne.s32.totalorder %s2272_s22, 0 }
 0x847   : > { %p2275_p12 = scmp.ge.s32.totalorder %s2273_s26, 2  ;;  %s965_s10 = scalar_lea.sflag [#allocation4], %s964_s29 }
 0x849   : > { %p1305_p13 = pnand %p2275_p12, %p2274_p7 }
 0x84b   : > { %1681 = dma.done.wait (!%p1305_p13), %s965_s10, 128  }
 0x84c   : > { %1683 = vsyncadd (!%p1305_p13), %s965_s10, 4294967168  ;;  %s974_s24 = scalar_lea.sflag [#allocation16], %s964_s29 }
 0x84d   : > { %1685 = dma.done.wait (!%p1305_p13), %s974_s24, 16  }
 0x84e   : > { %1687 = vsyncadd (!%p1305_p13), %s974_s24, 4294967280  ;;  %s2276_s30 = sld [smem:[#allocation27_spill]]  ;;  %s2277_s23 = sld [smem:[#allocation25_spill]] }
 0x84f   : > { %s2278_s29 = sld [smem:[#allocation28_spill]]  ;;  %s2279_s27 = smov %s1694_s28 }
 0x854   : > { %p28_p8 = scmp.ge.s32.totalorder %s2276_s30, 4   ;;  %s2280_s28 = smov %s2277_s23 }
 0x856   :  { %30 = sbr.rel (!%p28_p8) target bundleno = 16 (0x10), region = 141 }
 0x85d   :  { %978 = vsyncpa [#allocation3], 1 }
 0x85e   :  { %980 = vsyncpa [#allocation3 + $0x1], 1 }
 0x85f   :  { %981 = vsyncpa [#allocation6], 1 }
 0x860   :  { %982 = vsyncpa [#allocation9], 1 }
 0x861   :  { %983 = vsyncpa [#allocation12], 1 }
 0x862   :  { %984 = vsyncpa [#allocation4], 1 }
 0x863   :  { %986 = vsyncpa [#allocation4 + $0x1], 1 }
 0x864   :  { %987 = vsyncpa [#allocation16], 1 }
 0x865   :  { %989 = vsyncpa [#allocation16 + $0x1], 1 }

</bundles_post_ra>
